<compile_context>
chip_gen: v6e
topology: v6e:2x2x1
jax: 0.10.0
libtpu: 0.0.40
codegen_flags: <defaults>
</compile_context>

<pallas_src>
import functools

import jax
import jax.numpy as jnp
from jax.experimental import pallas as pl
from jax.experimental.pallas import tpu as pltpu

_LANES = 128


def _dice_partial_kernel(yt_ref, yp_ref, out_ref, acc_i, acc_s, *,
                         tile_rows, steps_per_core, rows, needs_mask):
    """Per-core lane-wise partial sums of y_true*y_pred and y_true+y_pred."""
    c = pl.program_id(0)          # core-split ("parallel") axis
    i = pl.program_id(1)          # row-tile ("arbitrary" reduction) axis

    @pl.when(i == 0)
    def _init():
        acc_i[...] = jnp.zeros_like(acc_i)
        acc_s[...] = jnp.zeros_like(acc_s)

    # Upcast the loaded tile in-kernel (inputs travel HBM->VMEM in native dtype).
    yt = yt_ref[...].astype(jnp.float32)
    yp = yp_ref[...].astype(jnp.float32)

    if needs_mask:
        # Static Python branch: only emitted when the grid over-covers `rows`.
        # Out-of-range / duplicated (clamped) blocks get limit <= 0 -> all zero.
        block_start = (c * steps_per_core + i) * tile_rows
        limit = rows - block_start
        row_ids = jax.lax.broadcasted_iota(jnp.int32, (tile_rows, 1), 0)
        valid = row_ids < limit
        yt = jnp.where(valid, yt, 0.0)
        yp = jnp.where(valid, yp, 0.0)

    acc_i[...] += jnp.sum(yt * yp, axis=0, keepdims=True)     # (1, 128)
    acc_s[...] += jnp.sum(yt + yp, axis=0, keepdims=True)     # (1, 128)

    @pl.when(i == steps_per_core - 1)
    def _finalize():
        out_ref[0, 0:1, :] = acc_i[...]
        out_ref[0, 1:2, :] = acc_s[...]


def dice_loss(y_pred, y_true, *, max_tile_rows=4096, num_cores=2):
    """y_pred, y_true: identically-sized arrays (any shape/dtype) -> scalar f32."""
    smooth = jnp.float32(1.0)
    yp = y_pred.reshape(-1)
    yt = y_true.reshape(-1)
    total = yp.shape[0]

    # Lane-dense (rows, 128) layout.  Pad at most 127 zeros (exact for all sums);
    # for the common numel % 128 == 0 case this branch never runs and the
    # wrapper performs zero extra HBM passes.
    rem = total % _LANES
    if rem:
        yp = jnp.pad(yp, (0, _LANES - rem))
        yt = jnp.pad(yt, (0, _LANES - rem))
    rows = yp.shape[0] // _LANES
    yp2 = yp.reshape(rows, _LANES)
    yt2 = yt.reshape(rows, _LANES)

    # Row-tile: multiple of the sublane packing of the native dtypes
    # (8 for 4-byte, 16 for 2-byte, 32 for 1-byte elements).
    pack = max(32 // jnp.dtype(yp2.dtype).itemsize,
               32 // jnp.dtype(yt2.dtype).itemsize)
    if rows <= max_tile_rows:
        tile_rows = rows                       # single block: full-dim exception
    else:
        tile_rows = max((max_tile_rows // pack) * pack, pack)

    n_blocks = pl.cdiv(rows, tile_rows)
    cores = max(1, min(num_cores, n_blocks))   # v7x megacore split (1 elsewhere)
    steps_per_core = pl.cdiv(n_blocks, cores)
    needs_mask = cores * steps_per_core * tile_rows != rows

    def row_block(c, i):
        # Clamp so over-covering tail slots stay in range; they are masked to
        # zero inside the kernel (limit <= 0).
        return (jnp.minimum(c * steps_per_core + i, n_blocks - 1), 0)

    kernel = functools.partial(
        _dice_partial_kernel,
        tile_rows=tile_rows, steps_per_core=steps_per_core,
        rows=rows, needs_mask=needs_mask)

    bytes_in = rows * _LANES * (jnp.dtype(yt2.dtype).itemsize
                                + jnp.dtype(yp2.dtype).itemsize)
    cost = pl.CostEstimate(flops=4 * rows * _LANES, transcendentals=0,
                           bytes_accessed=bytes_in + cores * 2 * _LANES * 4)

    partials = pl.pallas_call(
        kernel,
        out_shape=jax.ShapeDtypeStruct((cores, 2, _LANES), jnp.float32),
        grid=(cores, steps_per_core),
        in_specs=[
            pl.BlockSpec((tile_rows, _LANES), row_block),   # y_true tiles
            pl.BlockSpec((tile_rows, _LANES), row_block),   # y_pred tiles
        ],
        out_specs=pl.BlockSpec((1, 2, _LANES), lambda c, i: (c, 0, 0)),
        scratch_shapes=[
            pltpu.VMEM((1, _LANES), jnp.float32),   # lane sums of y_true*y_pred
            pltpu.VMEM((1, _LANES), jnp.float32),   # lane sums of y_true+y_pred
        ],
        compiler_params=pltpu.CompilerParams(
            dimension_semantics=("parallel", "arbitrary"),
        ),
        cost_estimate=cost,
    )(yt2, yp2)

    # Tiny (cores, 2, 128) cross-lane reduce + dice formula in plain JAX.
    intersection = jnp.sum(partials[:, 0, :])
    total_sum = jnp.sum(partials[:, 1, :])
    return 1.0 - (2.0 * intersection + smooth) / (total_sum + smooth)


if __name__ == "__main__":
    key = jax.random.PRNGKey(0)
    k1, k2 = jax.random.split(key)
    N, C, H, W = 2, 4, 16, 16
    y_pred = jax.random.uniform(k1, (N, C, H, W), dtype=jnp.float32)
    y_true = (jax.random.uniform(k2, (N, C, H, W)) > 0.5).astype(jnp.float32)

    loss = jax.jit(dice_loss)(y_pred, y_true)
    jax.block_until_ready(loss)

    # Cross-check against a plain-JAX transcription of the PyTorch forward.
    yt_f = y_true.reshape(-1)
    yp_f = y_pred.reshape(-1)
    ref = 1.0 - (2.0 * jnp.sum(yt_f * yp_f) + 1.0) / (
        jnp.sum(yt_f) + jnp.sum(yp_f) + 1.0)
    assert loss.shape == (), loss.shape
    assert jnp.allclose(loss, ref, rtol=1e-5, atol=1e-5), (loss, ref)

    # Second case: exercises the non-multiple-of-128 tail, multi-block tiling,
    # the 2-way core split, block-index clamping and in-kernel row masking.
    M = 3 * 5 * 7 * 128 + 77
    x2 = jax.random.uniform(jax.random.PRNGKey(1), (M,), dtype=jnp.float32)
    t2 = (jax.random.uniform(jax.random.PRNGKey(2), (M,)) > 0.5).astype(jnp.float32)
    loss2 = jax.jit(functools.partial(dice_loss, max_tile_rows=40))(x2, t2)
    jax.block_until_ready(loss2)
    ref2 = 1.0 - (2.0 * jnp.sum(t2 * x2) + 1.0) / (jnp.sum(t2) + jnp.sum(x2) + 1.0)
    assert jnp.allclose(loss2, ref2, rtol=1e-5, atol=1e-5), (loss2, ref2)

    print("KERNEL_OK")
</pallas_src>

<mosaic_0001>
module attributes {stable_mosaic.version = 11 : i64} {
  func.func @_dice_partial_kernel(%arg0: i32, %arg1: i32, %arg2: memref<16x128xf32, #tpu.memory_space<vmem>>, %arg3: memref<16x128xf32, #tpu.memory_space<vmem>>, %arg4: memref<1x2x128xf32, #tpu.memory_space<vmem>>, %arg5: memref<1x128xf32, #tpu.memory_space<vmem>>, %arg6: memref<1x128xf32, #tpu.memory_space<vmem>>) attributes {dimension_semantics = [#tpu.dimension_semantics<parallel>, #tpu.dimension_semantics<arbitrary>], iteration_bounds = array<i64: 1, 1>, scalar_prefetch = 0 : i64, scratch_operands = 2 : i64, tpu.core_type = #tpu.core_type<tc>, window_params = [{transform_indices = @transform_0, window_bounds = array<i64: 16, 128>}, {transform_indices = @transform_1, window_bounds = array<i64: 16, 128>}, {transform_indices = @transform_2, window_bounds = array<i64: 1, 2, 128>}]} {
    %c0_i32 = arith.constant 0 : i32
    %0 = arith.cmpi eq, %arg1, %c0_i32 : i32
    %1 = arith.extui %0 : i1 to i32
    %c0_i32_0 = arith.constant 0 : i32
    %2 = arith.cmpi ne, %1, %c0_i32_0 : i32
    scf.if %2 {
      %cst_15 = arith.constant 0.000000e+00 : f32
      %20 = vector.broadcast %cst_15 : f32 to vector<1x128xf32>
      %c0_16 = arith.constant 0 : index
      %c0_17 = arith.constant 0 : index
      %21 = vector.load %arg5[%c0_16, %c0_17] : memref<1x128xf32, #tpu.memory_space<vmem>>, vector<1x128xf32>
      tpu.vector_store %arg5[%c0_16, %c0_17], %20 {strides = array<i32>} : memref<1x128xf32, #tpu.memory_space<vmem>>, vector<1x128xf32>,
      %cst_18 = arith.constant 0.000000e+00 : f32
      %22 = vector.broadcast %cst_18 : f32 to vector<1x128xf32>
      %c0_19 = arith.constant 0 : index
      %c0_20 = arith.constant 0 : index
      %23 = vector.load %arg6[%c0_19, %c0_20] : memref<1x128xf32, #tpu.memory_space<vmem>>, vector<1x128xf32>
      tpu.vector_store %arg6[%c0_19, %c0_20], %22 {strides = array<i32>} : memref<1x128xf32, #tpu.memory_space<vmem>>, vector<1x128xf32>,
    } else {
    }
    %c0 = arith.constant 0 : index
    %c0_1 = arith.constant 0 : index
    %3 = vector.load %arg2[%c0, %c0_1] : memref<16x128xf32, #tpu.memory_space<vmem>>, vector<16x128xf32>
    %c0_2 = arith.constant 0 : index
    %c0_3 = arith.constant 0 : index
    %4 = vector.load %arg3[%c0_2, %c0_3] : memref<16x128xf32, #tpu.memory_space<vmem>>, vector<16x128xf32>
    %c0_4 = arith.constant 0 : index
    %c0_5 = arith.constant 0 : index
    %5 = vector.load %arg5[%c0_4, %c0_5] : memref<1x128xf32, #tpu.memory_space<vmem>>, vector<1x128xf32>
    %6 = arith.mulf %3, %4 : vector<16x128xf32>
    %cst = arith.constant dense<0.000000e+00> : vector<128xf32>
    %7 = vector.multi_reduction <add>, %6, %cst [0] : vector<16x128xf32> to vector<128xf32>
    %8 = vector.shape_cast %7 : vector<128xf32> to vector<1x128xf32>
    %9 = arith.addf %5, %8 : vector<1x128xf32>
    %c0_6 = arith.constant 0 : index
    %c0_7 = arith.constant 0 : index
    %10 = vector.load %arg5[%c0_6, %c0_7] : memref<1x128xf32, #tpu.memory_space<vmem>>, vector<1x128xf32>
    tpu.vector_store %arg5[%c0_6, %c0_7], %9 {strides = array<i32>} : memref<1x128xf32, #tpu.memory_space<vmem>>, vector<1x128xf32>,
    %c0_8 = arith.constant 0 : index
    %c0_9 = arith.constant 0 : index
    %11 = vector.load %arg6[%c0_8, %c0_9] : memref<1x128xf32, #tpu.memory_space<vmem>>, vector<1x128xf32>
    %12 = arith.addf %3, %4 : vector<16x128xf32>
    %cst_10 = arith.constant dense<0.000000e+00> : vector<128xf32>
    %13 = vector.multi_reduction <add>, %12, %cst_10 [0] : vector<16x128xf32> to vector<128xf32>
    %14 = vector.shape_cast %13 : vector<128xf32> to vector<1x128xf32>
    %15 = arith.addf %11, %14 : vector<1x128xf32>
    %c0_11 = arith.constant 0 : index
    %c0_12 = arith.constant 0 : index
    %16 = vector.load %arg6[%c0_11, %c0_12] : memref<1x128xf32, #tpu.memory_space<vmem>>, vector<1x128xf32>
    tpu.vector_store %arg6[%c0_11, %c0_12], %15 {strides = array<i32>} : memref<1x128xf32, #tpu.memory_space<vmem>>, vector<1x128xf32>,
    %c0_i32_13 = arith.constant 0 : i32
    %17 = arith.cmpi eq, %arg1, %c0_i32_13 : i32
    %18 = arith.extui %17 : i1 to i32
    %c0_i32_14 = arith.constant 0 : i32
    %19 = arith.cmpi ne, %18, %c0_i32_14 : i32
    scf.if %19 {
      %c0_15 = arith.constant 0 : index
      %c0_16 = arith.constant 0 : index
      %20 = vector.load %arg5[%c0_15, %c0_16] : memref<1x128xf32, #tpu.memory_space<vmem>>, vector<1x128xf32>
      %c0_17 = arith.constant 0 : index
      %c0_18 = arith.constant 0 : index
      %c0_19 = arith.constant 0 : index
      %21 = vector.load %arg4[%c0_17, %c0_18, %c0_19] : memref<1x2x128xf32, #tpu.memory_space<vmem>>, vector<1x1x128xf32>
      %22 = vector.shape_cast %21 : vector<1x1x128xf32> to vector<1x128xf32>
      %23 = vector.shape_cast %20 : vector<1x128xf32> to vector<1x1x128xf32>
      tpu.vector_store %arg4[%c0_17, %c0_18, %c0_19], %23 {strides = array<i32>} : memref<1x2x128xf32, #tpu.memory_space<vmem>>, vector<1x1x128xf32>,
      %c0_20 = arith.constant 0 : index
      %c0_21 = arith.constant 0 : index
      %24 = vector.load %arg6[%c0_20, %c0_21] : memref<1x128xf32, #tpu.memory_space<vmem>>, vector<1x128xf32>
      %c0_22 = arith.constant 0 : index
      %c1 = arith.constant 1 : index
      %c0_23 = arith.constant 0 : index
      %25 = vector.load %arg4[%c0_22, %c1, %c0_23] : memref<1x2x128xf32, #tpu.memory_space<vmem>>, vector<1x1x128xf32>
      %26 = vector.shape_cast %25 : vector<1x1x128xf32> to vector<1x128xf32>
      %27 = vector.shape_cast %24 : vector<1x128xf32> to vector<1x1x128xf32>
      tpu.vector_store %arg4[%c0_22, %c1, %c0_23], %27 {strides = array<i32>} : memref<1x2x128xf32, #tpu.memory_space<vmem>>, vector<1x1x128xf32>,
    } else {
    }
    return
  }
  func.func @transform_0(%arg0: i32, %arg1: i32) -> (i32, i32) {
    %c1_i32 = arith.constant 1 : i32
    %0 = arith.muli %arg0, %c1_i32 : i32
    %1 = arith.addi %0, %arg1 : i32
    %c0_i32 = arith.constant 0 : i32
    %2 = arith.minsi %1, %c0_i32 : i32
    %c0_i32_0 = arith.constant 0 : i32
    %c0_i32_1 = arith.constant 0 : i32
    return %2, %c0_i32_0 : i32, i32
  }
  func.func @transform_1(%arg0: i32, %arg1: i32) -> (i32, i32) {
    %c1_i32 = arith.constant 1 : i32
    %0 = arith.muli %arg0, %c1_i32 : i32
    %1 = arith.addi %0, %arg1 : i32
    %c0_i32 = arith.constant 0 : i32
    %2 = arith.minsi %1, %c0_i32 : i32
    %c0_i32_0 = arith.constant 0 : i32
    %c0_i32_1 = arith.constant 0 : i32
    return %2, %c0_i32_0 : i32, i32
  }
  func.func @transform_2(%arg0: i32, %arg1: i32) -> (i32, i32, i32) {
    %c0_i32 = arith.constant 0 : i32
    %c0_i32_0 = arith.constant 0 : i32
    %c0_i32_1 = arith.constant 0 : i32
    return %arg0, %c0_i32, %c0_i32_0 : i32, i32, i32
  }
}

</mosaic_0001>

<bundles_post_ra>
// kernel: dice_loss.1
= control target key start
LH: loop header
LB: loop body
LE: loop exit
PB: predicated region body
PF: predicated region fallthrough
CT: control target
= control target key end

     0   :  { %v133_v0 = vmov 0.0   ;;  %s167_s0 = inlined_call_operand.vmem [shape: f32[16,128], index: 0, kind: input, shape index: {}]   ;;  %s168_s1 = inlined_call_operand.vmem [shape: f32[16,128], index: 1, kind: input, shape index: {}]   ;;  %s169_s2 = inlined_call_operand.vmem [shape: f32[1,2,128], index: 2, kind: output, shape index: {}]  }
   0x1   :  { %79 = vst [vmem:[#allocation2] sm:$0x1] %v133_v0  ;;  %80 = vst [vmem:[#allocation3] sm:$0x1] %v133_v0  ;;  %v81_v1 = vld [vmem:[%s167_s0] sm:$0xff]  ;;  %v82_v2 = vld [vmem:[%s167_s0 + $0x8] sm:$0xff] }
   0x2   :  { %v83_v3 = vld [vmem:[%s168_s1] sm:$0xff]  ;;  %v84_v4 = vld [vmem:[%s168_s1 + $0x8] sm:$0xff] }
   0x3   :  { %v86_v5 = vmul.f32 %v83_v3, %v81_v1  ;;  %v98_v6 = vadd.f32 %v83_v3, %v81_v1  ;;  %v87_v7 = vmul.f32 %v84_v4, %v82_v2  ;;  %v99_v8 = vadd.f32 %v84_v4, %v82_v2 }
   0x5   :  { %v88_v9 = vadd.f32 %v87_v7, %v86_v5  ;;  %v100_v10 = vadd.f32 %v99_v8, %v98_v6 }
   0x7   :  { %v89_v11 = vrot.slane %v88_v9, 4  ;;  %v101_v12 = vrot.slane %v100_v10, 4 }
   0x8   :  { %v85_v21 = vld [vmem:[#allocation2] sm:$0x1]  ;;  %v97_v22 = vld [vmem:[#allocation3] sm:$0x1] }
   0x9   :  { %v90_v13 = vadd.f32 %v89_v11, %v88_v9  ;;  %v102_v14 = vadd.f32 %v101_v12, %v100_v10 }
   0xb   :  { %v91_v15 = vrot.slane %v90_v13, 2  ;;  %v103_v16 = vrot.slane %v102_v14, 2 }
   0xd   :  { %v92_v17 = vadd.f32 %v91_v15, %v90_v13  ;;  %v104_v18 = vadd.f32 %v103_v16, %v102_v14 }
   0xf   :  { %v93_v19 = vrot.slane %v92_v17, 1  ;;  %v105_v20 = vrot.slane %v104_v18, 1 }
  0x11   :  { %v94_v23 = vadd.f32 %v93_v19, %v92_v17  ;;  %v106_v24 = vadd.f32 %v105_v20, %v104_v18 }
  0x13   :  { %v95_v25 = vadd.f32 %v94_v23, %v85_v21  ;;  %v107_v26 = vadd.f32 %v106_v24, %v97_v22 }
  0x15   :  { %96 = vst [vmem:[#allocation2] sm:$0x1] %v95_v25  ;;  %108 = vst [vmem:[#allocation3] sm:$0x1] %v107_v26 }
  0x1c   :  { %v112_v27 = vld [vmem:[#allocation2] sm:$0x1]  ;;  %v114_v28 = vld [vmem:[#allocation3] sm:$0x1] }
  0x1d   :  { %113 = vst [vmem:[%s169_s2] sm:$0x1] %v112_v27  ;;  %115 = vst [vmem:[%s169_s2 + $0x1] sm:$0x1] %v114_v28 }

</bundles_post_ra>
